<compile_context>
chip_gen: v7x
topology: tpu7x:2x2x1
jax: 0.10.0
libtpu: 0.0.40
codegen_flags: <defaults>
</compile_context>

<pallas_src>
import math

import jax
import jax.numpy as jnp
from jax.experimental import pallas as pl
from jax.experimental.pallas import tpu as pltpu


NCLASS_PAD = 128  # lane-dense classifier output width


def gcn_kernel(x_ref, adj_ref,
               w1_ref, b1_ref,
               w2_ref, b2_ref,
               w3_ref, b3_ref,
               wf1_ref, bf1_ref,
               wf2_ref, bf2_ref,
               out_ref):
    """One grid step == one graph.

    Matmul operands arrive in the compute dtype (bf16 on v6e/v7x for the
    native MXU path); accumulation is f32 via preferred_element_type; biases
    stay f32 and are added to the f32 accumulators.
    """
    cdt = x_ref.dtype
    x = x_ref[0]          # [N, F]   (compute dtype)
    adj = adj_ref[0]      # [N, N]   (compute dtype)
    n = x.shape[0]

    def gc_layer(h, w_ref, b_ref):
        # support = h @ W ; out = relu(adj @ support + b)
        s = jnp.dot(h, w_ref[...], preferred_element_type=jnp.float32)
        o = jnp.dot(adj, s.astype(cdt), preferred_element_type=jnp.float32)
        o = o + b_ref[...]
        return jnp.maximum(o, 0.0).astype(cdt)

    h = gc_layer(x, w1_ref, b1_ref)    # [N, 32]
    h = gc_layer(h, w2_ref, b2_ref)    # [N, 48]
    h = gc_layer(h, w3_ref, b3_ref)    # [N, 64]

    # mean over nodes as a ones-row matmul (MXU slot, keeps the XLU free)
    pool = jnp.full((1, n), 1.0 / n, dtype=cdt)
    y = jnp.dot(pool, h, preferred_element_type=jnp.float32)          # [1, 64]

    # fc1 + relu
    y = jnp.dot(y.astype(cdt), wf1_ref[...],
                preferred_element_type=jnp.float32) + bf1_ref[...]
    y = jnp.maximum(y, 0.0).astype(cdt)                               # [1, 32]

    # fc2 (lane-padded: padded classes have zero weight and -1e9 bias)
    z = jnp.dot(y, wf2_ref[...],
                preferred_element_type=jnp.float32) + bf2_ref[...]    # [1, 128]

    # softmax over the class vector (padded lanes get ~0 mass)
    z = z - jnp.max(z, axis=-1, keepdims=True)
    e = jnp.exp(z)
    inv = pl.reciprocal(jnp.sum(e, axis=-1, keepdims=True), approx=True)
    out_ref[0] = e * inv


def gcn_forward(x, adj, params, *, compute_dtype=jnp.bfloat16):
    """Batched forward.  x: [G, N, F] f32, adj: [G, N, N] f32.

    Returns softmax class probabilities [G, nclass] (f32).
    """
    G, N, F = x.shape
    nclass = params["wf2"].shape[1]
    cdt = compute_dtype

    # matmul operands in compute dtype; biases stay f32 (the accumulator dtype)
    xc = x.astype(cdt)
    adjc = adj.astype(cdt)
    w1 = params["w1"].astype(cdt)
    w2 = params["w2"].astype(cdt)
    w3 = params["w3"].astype(cdt)
    wf1 = params["wf1"].astype(cdt)
    b1 = params["b1"].reshape(1, -1).astype(jnp.float32)
    b2 = params["b2"].reshape(1, -1).astype(jnp.float32)
    b3 = params["b3"].reshape(1, -1).astype(jnp.float32)
    bf1 = params["bf1"].reshape(1, -1).astype(jnp.float32)

    # lane-dense classifier head: pad classes to 128 lanes.  Padded columns
    # get zero weight and a large negative bias so exp() gives them 0 mass.
    wf2 = jnp.zeros((params["wf2"].shape[0], NCLASS_PAD), cdt)
    wf2 = wf2.at[:, :nclass].set(params["wf2"].astype(cdt))
    bf2 = jnp.full((1, NCLASS_PAD), -1e9, jnp.float32)
    bf2 = bf2.at[0, :nclass].set(params["bf2"].astype(jnp.float32))

    def rep_spec(a):
        # same block index every grid step -> weights stay resident, no re-DMA
        return pl.BlockSpec(a.shape, lambda g, _nd=a.ndim: (0,) * _nd)

    out = pl.pallas_call(
        gcn_kernel,
        out_shape=jax.ShapeDtypeStruct((G, 1, NCLASS_PAD), jnp.float32),
        grid_spec=pltpu.PrefetchScalarGridSpec(
            num_scalar_prefetch=0,
            grid=(G,),
            in_specs=[
                pl.BlockSpec((1, N, F), lambda g: (g, 0, 0)),
                pl.BlockSpec((1, N, N), lambda g: (g, 0, 0)),
                rep_spec(w1), rep_spec(b1),
                rep_spec(w2), rep_spec(b2),
                rep_spec(w3), rep_spec(b3),
                rep_spec(wf1), rep_spec(bf1),
                rep_spec(wf2), rep_spec(bf2),
            ],
            out_specs=pl.BlockSpec((1, 1, NCLASS_PAD), lambda g: (g, 0, 0)),
        ),
        compiler_params=pltpu.CompilerParams(
            # graph axis is embarrassingly parallel -> megacore shards it (v7x)
            dimension_semantics=("parallel",),
        ),
    )(xc, adjc, w1, b1, w2, b2, w3, b3, wf1, bf1, wf2, bf2)

    return out[:, 0, :nclass]   # [G, nclass]


def init_params(key, nfeat, nclass):
    """Deterministic init mirroring the PyTorch module's reset_parameters /
    nn.Linear default init: uniform(-1/sqrt(fan), 1/sqrt(fan))."""
    def gc_layer(k, fin, fout):
        stdv = 1.0 / math.sqrt(fout)
        kw, kb = jax.random.split(k)
        w = jax.random.uniform(kw, (fin, fout), jnp.float32, -stdv, stdv)
        b = jax.random.uniform(kb, (fout,), jnp.float32, -stdv, stdv)
        return w, b

    def linear_layer(k, fin, fout):
        bound = 1.0 / math.sqrt(fin)
        kw, kb = jax.random.split(k)
        # stored as [in, out] so the kernel computes y @ W
        w = jax.random.uniform(kw, (fin, fout), jnp.float32, -bound, bound)
        b = jax.random.uniform(kb, (fout,), jnp.float32, -bound, bound)
        return w, b

    k1, k2, k3, k4, k5 = jax.random.split(key, 5)
    w1, b1 = gc_layer(k1, nfeat, 32)
    w2, b2 = gc_layer(k2, 32, 48)
    w3, b3 = gc_layer(k3, 48, 64)
    wf1, bf1 = linear_layer(k4, 64, 32)
    wf2, bf2 = linear_layer(k5, 32, nclass)
    return dict(w1=w1, b1=b1, w2=w2, b2=b2, w3=w3, b3=b3,
                wf1=wf1, bf1=bf1, wf2=wf2, bf2=bf2)


def gcn_reference_single(x, adj, params):
    """Pure-JAX reference of the PyTorch forward (eval mode), one graph."""
    h = jax.nn.relu(adj @ (x @ params["w1"]) + params["b1"])
    h = jax.nn.relu(adj @ (h @ params["w2"]) + params["b2"])
    h = jax.nn.relu(adj @ (h @ params["w3"]) + params["b3"])
    y = jnp.mean(h, axis=0)
    y = jax.nn.relu(y @ params["wf1"] + params["bf1"])
    z = y @ params["wf2"] + params["bf2"]
    return jax.nn.softmax(z, axis=0)


if __name__ == "__main__":
    G = 8          # graphs per batch (one grid point per graph)
    N = 64         # nodes per graph
    NFEAT = 16     # input feature dimension
    NCLASS = 4     # number of classes

    key = jax.random.PRNGKey(0)
    kx, kadj, kp = jax.random.split(key, 3)

    x = jax.random.normal(kx, (G, N, NFEAT), jnp.float32)

    # symmetric, row-normalized adjacency with self loops (dense spmm input)
    a = (jax.random.uniform(kadj, (G, N, N)) > 0.8).astype(jnp.float32)
    a = jnp.maximum(a, jnp.swapaxes(a, -1, -2)) + jnp.eye(N, dtype=jnp.float32)[None]
    deg = jnp.sum(a, axis=-1, keepdims=True)
    adj = a / deg

    params = init_params(kp, NFEAT, NCLASS)

    ref = jax.vmap(lambda xg, ag: gcn_reference_single(xg, ag, params))(x, adj)

    # f32 compute path (approx reciprocal in softmax -> slightly loosened tol)
    out_f32 = jax.block_until_ready(
        gcn_forward(x, adj, params, compute_dtype=jnp.float32))
    assert out_f32.shape == (G, NCLASS)
    assert jnp.allclose(out_f32, ref, atol=5e-3, rtol=5e-3), (out_f32, ref)
    assert jnp.allclose(jnp.sum(out_f32, axis=-1), 1.0, atol=5e-3)

    # bf16 compute path (native MXU path on v6e/v7x; loosened tolerance)
    out_bf16 = jax.block_until_ready(
        gcn_forward(x, adj, params, compute_dtype=jnp.bfloat16))
    assert out_bf16.shape == (G, NCLASS)
    assert jnp.allclose(out_bf16, ref, atol=3e-2, rtol=3e-2), (out_bf16, ref)
    assert jnp.allclose(jnp.sum(out_bf16, axis=-1), 1.0, atol=3e-2)

    print("KERNEL_OK")
</pallas_src>

<mosaic_0001>
module attributes {stable_mosaic.version = 11 : i64} {
  func.func @gcn_kernel(%arg0: i32, %arg1: memref<1x64x16xf32, #tpu.memory_space<vmem>>, %arg2: memref<1x64x64xf32, #tpu.memory_space<vmem>>, %arg3: memref<16x32xf32, #tpu.memory_space<vmem>>, %arg4: memref<1x32xf32, #tpu.memory_space<vmem>>, %arg5: memref<32x48xf32, #tpu.memory_space<vmem>>, %arg6: memref<1x48xf32, #tpu.memory_space<vmem>>, %arg7: memref<48x64xf32, #tpu.memory_space<vmem>>, %arg8: memref<1x64xf32, #tpu.memory_space<vmem>>, %arg9: memref<64x32xf32, #tpu.memory_space<vmem>>, %arg10: memref<1x32xf32, #tpu.memory_space<vmem>>, %arg11: memref<32x128xf32, #tpu.memory_space<vmem>>, %arg12: memref<1x128xf32, #tpu.memory_space<vmem>>, %arg13: memref<1x1x128xf32, #tpu.memory_space<vmem>>) attributes {dimension_semantics = [#tpu.dimension_semantics<parallel>], iteration_bounds = array<i64: 8>, scalar_prefetch = 0 : i64, scratch_operands = 0 : i64, tpu.core_type = #tpu.core_type<tc>, window_params = [{transform_indices = @transform_0, window_bounds = array<i64: 1, 64, 16>}, {transform_indices = @transform_1, window_bounds = array<i64: 1, 64, 64>}, {pipeline_mode = #tpu.pipeline_mode<synchronous>, transform_indices = @transform_2, window_bounds = array<i64: 16, 32>}, {pipeline_mode = #tpu.pipeline_mode<synchronous>, transform_indices = @transform_3, window_bounds = array<i64: 1, 32>}, {pipeline_mode = #tpu.pipeline_mode<synchronous>, transform_indices = @transform_4, window_bounds = array<i64: 32, 48>}, {pipeline_mode = #tpu.pipeline_mode<synchronous>, transform_indices = @transform_5, window_bounds = array<i64: 1, 48>}, {pipeline_mode = #tpu.pipeline_mode<synchronous>, transform_indices = @transform_6, window_bounds = array<i64: 48, 64>}, {pipeline_mode = #tpu.pipeline_mode<synchronous>, transform_indices = @transform_7, window_bounds = array<i64: 1, 64>}, {pipeline_mode = #tpu.pipeline_mode<synchronous>, transform_indices = @transform_8, window_bounds = array<i64: 64, 32>}, {pipeline_mode = #tpu.pipeline_mode<synchronous>, transform_indices = @transform_9, window_bounds = array<i64: 1, 32>}, {pipeline_mode = #tpu.pipeline_mode<synchronous>, transform_indices = @transform_10, window_bounds = array<i64: 32, 128>}, {pipeline_mode = #tpu.pipeline_mode<synchronous>, transform_indices = @transform_11, window_bounds = array<i64: 1, 128>}, {transform_indices = @transform_12, window_bounds = array<i64: 1, 1, 128>}]} {
    %c0 = arith.constant 0 : index
    %c0_0 = arith.constant 0 : index
    %c0_1 = arith.constant 0 : index
    %0 = vector.load %arg1[%c0, %c0_0, %c0_1] : memref<1x64x16xf32, #tpu.memory_space<vmem>>, vector<1x64x16xf32>
    %1 = vector.shape_cast %0 : vector<1x64x16xf32> to vector<64x16xf32>
    %c0_2 = arith.constant 0 : index
    %c0_3 = arith.constant 0 : index
    %c0_4 = arith.constant 0 : index
    %2 = vector.load %arg2[%c0_2, %c0_3, %c0_4] : memref<1x64x64xf32, #tpu.memory_space<vmem>>, vector<1x64x64xf32>
    %3 = vector.shape_cast %2 : vector<1x64x64xf32> to vector<64x64xf32>
    %c0_5 = arith.constant 0 : index
    %c0_6 = arith.constant 0 : index
    %4 = vector.load %arg3[%c0_5, %c0_6] : memref<16x32xf32, #tpu.memory_space<vmem>>, vector<16x32xf32>
    %cst = arith.constant dense<0.000000e+00> : vector<64x32xf32>
    %5 = tpu.matmul %1, %4, %cst {dimension_numbers = #tpu.dot_dimension_numbers<[1], [0], [0], [1], [0, 0, 1, 1], [], []>} : vector<64x16xf32>, vector<16x32xf32>, vector<64x32xf32> -> vector<64x32xf32>
    %cst_7 = arith.constant dense<0.000000e+00> : vector<64x32xf32>
    %6 = tpu.matmul %3, %5, %cst_7 {dimension_numbers = #tpu.dot_dimension_numbers<[1], [0], [0], [1], [0, 0, 1, 1], [], []>} : vector<64x64xf32>, vector<64x32xf32>, vector<64x32xf32> -> vector<64x32xf32>
    %c0_8 = arith.constant 0 : index
    %c0_9 = arith.constant 0 : index
    %7 = vector.load %arg4[%c0_8, %c0_9] : memref<1x32xf32, #tpu.memory_space<vmem>>, vector<1x32xf32>
    %8 = vector.broadcast %7 : vector<1x32xf32> to vector<64x32xf32>
    %9 = arith.addf %6, %8 : vector<64x32xf32>
    %cst_10 = arith.constant 0.000000e+00 : f32
    %10 = vector.broadcast %cst_10 : f32 to vector<64x32xf32>
    %11 = arith.maximumf %9, %10 : vector<64x32xf32>
    %c0_11 = arith.constant 0 : index
    %c0_12 = arith.constant 0 : index
    %12 = vector.load %arg5[%c0_11, %c0_12] : memref<32x48xf32, #tpu.memory_space<vmem>>, vector<32x48xf32>
    %cst_13 = arith.constant dense<0.000000e+00> : vector<64x48xf32>
    %13 = tpu.matmul %11, %12, %cst_13 {dimension_numbers = #tpu.dot_dimension_numbers<[1], [0], [0], [1], [0, 0, 1, 1], [], []>} : vector<64x32xf32>, vector<32x48xf32>, vector<64x48xf32> -> vector<64x48xf32>
    %cst_14 = arith.constant dense<0.000000e+00> : vector<64x48xf32>
    %14 = tpu.matmul %3, %13, %cst_14 {dimension_numbers = #tpu.dot_dimension_numbers<[1], [0], [0], [1], [0, 0, 1, 1], [], []>} : vector<64x64xf32>, vector<64x48xf32>, vector<64x48xf32> -> vector<64x48xf32>
    %c0_15 = arith.constant 0 : index
    %c0_16 = arith.constant 0 : index
    %15 = vector.load %arg6[%c0_15, %c0_16] : memref<1x48xf32, #tpu.memory_space<vmem>>, vector<1x48xf32>
    %16 = vector.broadcast %15 : vector<1x48xf32> to vector<64x48xf32>
    %17 = arith.addf %14, %16 : vector<64x48xf32>
    %cst_17 = arith.constant 0.000000e+00 : f32
    %18 = vector.broadcast %cst_17 : f32 to vector<64x48xf32>
    %19 = arith.maximumf %17, %18 : vector<64x48xf32>
    %c0_18 = arith.constant 0 : index
    %c0_19 = arith.constant 0 : index
    %20 = vector.load %arg7[%c0_18, %c0_19] : memref<48x64xf32, #tpu.memory_space<vmem>>, vector<48x64xf32>
    %cst_20 = arith.constant dense<0.000000e+00> : vector<64x64xf32>
    %21 = tpu.matmul %19, %20, %cst_20 {dimension_numbers = #tpu.dot_dimension_numbers<[1], [0], [0], [1], [0, 0, 1, 1], [], []>} : vector<64x48xf32>, vector<48x64xf32>, vector<64x64xf32> -> vector<64x64xf32>
    %cst_21 = arith.constant dense<0.000000e+00> : vector<64x64xf32>
    %22 = tpu.matmul %3, %21, %cst_21 {dimension_numbers = #tpu.dot_dimension_numbers<[1], [0], [0], [1], [0, 0, 1, 1], [], []>} : vector<64x64xf32>, vector<64x64xf32>, vector<64x64xf32> -> vector<64x64xf32>
    %c0_22 = arith.constant 0 : index
    %c0_23 = arith.constant 0 : index
    %23 = vector.load %arg8[%c0_22, %c0_23] : memref<1x64xf32, #tpu.memory_space<vmem>>, vector<1x64xf32>
    %24 = vector.broadcast %23 : vector<1x64xf32> to vector<64x64xf32>
    %25 = arith.addf %22, %24 : vector<64x64xf32>
    %cst_24 = arith.constant 0.000000e+00 : f32
    %26 = vector.broadcast %cst_24 : f32 to vector<64x64xf32>
    %27 = arith.maximumf %25, %26 : vector<64x64xf32>
    %cst_25 = arith.constant 1.562500e-02 : f32
    %28 = vector.broadcast %cst_25 : f32 to vector<1x64xf32>
    %cst_26 = arith.constant dense<0.000000e+00> : vector<1x64xf32>
    %29 = tpu.matmul %28, %27, %cst_26 {dimension_numbers = #tpu.dot_dimension_numbers<[1], [0], [0], [1], [0, 0, 1, 1], [], []>} : vector<1x64xf32>, vector<64x64xf32>, vector<1x64xf32> -> vector<1x64xf32>
    %c0_27 = arith.constant 0 : index
    %c0_28 = arith.constant 0 : index
    %30 = vector.load %arg9[%c0_27, %c0_28] : memref<64x32xf32, #tpu.memory_space<vmem>>, vector<64x32xf32>
    %cst_29 = arith.constant dense<0.000000e+00> : vector<1x32xf32>
    %31 = tpu.matmul %29, %30, %cst_29 {dimension_numbers = #tpu.dot_dimension_numbers<[1], [0], [0], [1], [0, 0, 1, 1], [], []>} : vector<1x64xf32>, vector<64x32xf32>, vector<1x32xf32> -> vector<1x32xf32>
    %c0_30 = arith.constant 0 : index
    %c0_31 = arith.constant 0 : index
    %32 = vector.load %arg10[%c0_30, %c0_31] : memref<1x32xf32, #tpu.memory_space<vmem>>, vector<1x32xf32>
    %33 = arith.addf %31, %32 : vector<1x32xf32>
    %cst_32 = arith.constant 0.000000e+00 : f32
    %34 = vector.broadcast %cst_32 : f32 to vector<1x32xf32>
    %35 = arith.maximumf %33, %34 : vector<1x32xf32>
    %c0_33 = arith.constant 0 : index
    %c0_34 = arith.constant 0 : index
    %36 = vector.load %arg11[%c0_33, %c0_34] : memref<32x128xf32, #tpu.memory_space<vmem>>, vector<32x128xf32>
    %cst_35 = arith.constant dense<0.000000e+00> : vector<1x128xf32>
    %37 = tpu.matmul %35, %36, %cst_35 {dimension_numbers = #tpu.dot_dimension_numbers<[1], [0], [0], [1], [0, 0, 1, 1], [], []>} : vector<1x32xf32>, vector<32x128xf32>, vector<1x128xf32> -> vector<1x128xf32>
    %c0_36 = arith.constant 0 : index
    %c0_37 = arith.constant 0 : index
    %38 = vector.load %arg12[%c0_36, %c0_37] : memref<1x128xf32, #tpu.memory_space<vmem>>, vector<1x128xf32>
    %39 = arith.addf %37, %38 : vector<1x128xf32>
    %cst_38 = arith.constant dense<0xFF800000> : vector<1xf32>
    %40 = vector.multi_reduction <maximumf>, %39, %cst_38 [1] : vector<1x128xf32> to vector<1xf32>
    %41 = vector.shape_cast %40 : vector<1xf32> to vector<1x1xf32>
    %42 = vector.broadcast %41 : vector<1x1xf32> to vector<1x128xf32>
    %43 = arith.subf %39, %42 : vector<1x128xf32>
    %44 = math.exp %43 : vector<1x128xf32>
    %cst_39 = arith.constant dense<0.000000e+00> : vector<1xf32>
    %45 = vector.multi_reduction <add>, %44, %cst_39 [1] : vector<1x128xf32> to vector<1xf32>
    %46 = vector.shape_cast %45 : vector<1xf32> to vector<1x1xf32>
    %47 = tpu.reciprocal %46 {approx = true} : vector<1x1xf32> -> vector<1x1xf32>
    %48 = vector.broadcast %47 : vector<1x1xf32> to vector<1x128xf32>
    %49 = arith.mulf %44, %48 : vector<1x128xf32>
    %c0_40 = arith.constant 0 : index
    %c0_41 = arith.constant 0 : index
    %c0_42 = arith.constant 0 : index
    %50 = vector.load %arg13[%c0_40, %c0_41, %c0_42] : memref<1x1x128xf32, #tpu.memory_space<vmem>>, vector<1x1x128xf32>
    %51 = vector.shape_cast %50 : vector<1x1x128xf32> to vector<1x128xf32>
    %52 = vector.shape_cast %49 : vector<1x128xf32> to vector<1x1x128xf32>
    tpu.vector_store %arg13[%c0_40, %c0_41, %c0_42], %52 {strides = array<i32>} : memref<1x1x128xf32, #tpu.memory_space<vmem>>, vector<1x1x128xf32>,
    return
  }
  func.func @transform_0(%arg0: i32) -> (i32, i32, i32) {
    %c0_i32 = arith.constant 0 : i32
    %c0_i32_0 = arith.constant 0 : i32
    %c0_i32_1 = arith.constant 0 : i32
    return %arg0, %c0_i32, %c0_i32_0 : i32, i32, i32
  }
  func.func @transform_1(%arg0: i32) -> (i32, i32, i32) {
    %c0_i32 = arith.constant 0 : i32
    %c0_i32_0 = arith.constant 0 : i32
    %c0_i32_1 = arith.constant 0 : i32
    return %arg0, %c0_i32, %c0_i32_0 : i32, i32, i32
  }
  func.func @transform_2(%arg0: i32) -> (i32, i32) {
    %c0_i32 = arith.constant 0 : i32
    %c0_i32_0 = arith.constant 0 : i32
    %c0_i32_1 = arith.constant 0 : i32
    return %c0_i32, %c0_i32_0 : i32, i32
  }
  func.func @transform_3(%arg0: i32) -> (i32, i32) {
    %c0_i32 = arith.constant 0 : i32
    %c0_i32_0 = arith.constant 0 : i32
    %c0_i32_1 = arith.constant 0 : i32
    return %c0_i32, %c0_i32_0 : i32, i32
  }
  func.func @transform_4(%arg0: i32) -> (i32, i32) {
    %c0_i32 = arith.constant 0 : i32
    %c0_i32_0 = arith.constant 0 : i32
    %c0_i32_1 = arith.constant 0 : i32
    return %c0_i32, %c0_i32_0 : i32, i32
  }
  func.func @transform_5(%arg0: i32) -> (i32, i32) {
    %c0_i32 = arith.constant 0 : i32
    %c0_i32_0 = arith.constant 0 : i32
    %c0_i32_1 = arith.constant 0 : i32
    return %c0_i32, %c0_i32_0 : i32, i32
  }
  func.func @transform_6(%arg0: i32) -> (i32, i32) {
    %c0_i32 = arith.constant 0 : i32
    %c0_i32_0 = arith.constant 0 : i32
    %c0_i32_1 = arith.constant 0 : i32
    return %c0_i32, %c0_i32_0 : i32, i32
  }
  func.func @transform_7(%arg0: i32) -> (i32, i32) {
    %c0_i32 = arith.constant 0 : i32
    %c0_i32_0 = arith.constant 0 : i32
    %c0_i32_1 = arith.constant 0 : i32
    return %c0_i32, %c0_i32_0 : i32, i32
  }
  func.func @transform_8(%arg0: i32) -> (i32, i32) {
    %c0_i32 = arith.constant 0 : i32
    %c0_i32_0 = arith.constant 0 : i32
    %c0_i32_1 = arith.constant 0 : i32
    return %c0_i32, %c0_i32_0 : i32, i32
  }
  func.func @transform_9(%arg0: i32) -> (i32, i32) {
    %c0_i32 = arith.constant 0 : i32
    %c0_i32_0 = arith.constant 0 : i32
    %c0_i32_1 = arith.constant 0 : i32
    return %c0_i32, %c0_i32_0 : i32, i32
  }
  func.func @transform_10(%arg0: i32) -> (i32, i32) {
    %c0_i32 = arith.constant 0 : i32
    %c0_i32_0 = arith.constant 0 : i32
    %c0_i32_1 = arith.constant 0 : i32
    return %c0_i32, %c0_i32_0 : i32, i32
  }
  func.func @transform_11(%arg0: i32) -> (i32, i32) {
    %c0_i32 = arith.constant 0 : i32
    %c0_i32_0 = arith.constant 0 : i32
    %c0_i32_1 = arith.constant 0 : i32
    return %c0_i32, %c0_i32_0 : i32, i32
  }
  func.func @transform_12(%arg0: i32) -> (i32, i32, i32) {
    %c0_i32 = arith.constant 0 : i32
    %c0_i32_0 = arith.constant 0 : i32
    %c0_i32_1 = arith.constant 0 : i32
    return %arg0, %c0_i32, %c0_i32_0 : i32, i32, i32
  }
}

</mosaic_0001>

<bundles_post_ra>
// kernel: tpu_custom_call.1
= control target key start
LH: loop header
LB: loop body
LE: loop exit
PB: predicated region body
PF: predicated region fallthrough
CT: control target
= control target key end

     0   :  { %s2515_s0 = inlined_call_operand.vmem [shape: f32[8,64,16], index: 0, kind: input, shape index: {}]   ;;  %s2516_s1 = inlined_call_operand.vmem [shape: f32[8,64,64], index: 1, kind: input, shape index: {}]   ;;  %s2517_s2 = inlined_call_operand.vmem [shape: f32[16,32], index: 2, kind: input, shape index: {}]   ;;  %s2518_s3 = inlined_call_operand.vmem [shape: f32[1,32], index: 3, kind: input, shape index: {}]   ;;  %s2519_s4 = inlined_call_operand.vmem [shape: f32[32,48], index: 4, kind: input, shape index: {}]   ;;  %s2520_s5 = inlined_call_operand.vmem [shape: f32[1,48], index: 5, kind: input, shape index: {}]   ;;  %s2521_s6 = inlined_call_operand.vmem [shape: f32[48,64], index: 6, kind: input, shape index: {}]   ;;  %s2522_s7 = inlined_call_operand.vmem [shape: f32[1,64], index: 7, kind: input, shape index: {}]   ;;  %s2523_s8 = inlined_call_operand.vmem [shape: f32[64,32], index: 8, kind: input, shape index: {}]   ;;  %s2524_s9 = inlined_call_operand.vmem [shape: f32[1,32], index: 9, kind: input, shape index: {}]   ;;  %s2525_s10 = inlined_call_operand.vmem [shape: f32[32,128], index: 10, kind: input, shape index: {}]   ;;  %s2526_s11 = inlined_call_operand.vmem [shape: f32[1,128], index: 11, kind: input, shape index: {}]   ;;  %s2527_s12 = inlined_call_operand.hbm [shape: f32[8,1,128], index: 12, kind: output, shape index: {}]  }
   0x1   :  { %2528 = sst [smem:[#allocation5_spill]] %s2515_s0 }
   0x2   :  { %2529 = sst [smem:[#allocation6_spill]] %s2516_s1 }
   0x3   :  { %17 = vsyncpa [#allocation3], 0 }
   0x4   :  { %19 = vsyncpa [#allocation3 + $0x1], 0  ;;  %s2211_s21 = smov 0   ;;  %s2213_s22 = smov 0  }
   0x5   :  { %s2215_s23 = smov 0   ;;  %s2217_s24 = smov 0  }
   0x6 LB: > { %s2232_s25 = sadd.s32 4294967295, %s2139_s24   ;;  %s1561_s26 = sadd.s32 4294967294, %s2139_s24   ;;  %s2139_s24 = sphi %s2217_s24, %s2537_s24   ;;  %s2135_s23 = sphi %s2215_s23, %s2536_s23   ;;  %s2131_s22 = sphi %s2213_s22, %s2535_s22   ;;  %s2127_s21 = sphi %s2211_s21, %s2534_s21  }
   0x7   : > { %s2236_s27 = sadd.s32 1, %s2139_s24   ;;  %s294_s28 = sadd.s32 1, %s2135_s23 }
   0x8   : > { %s291_s29 = ssub.s32 %s2139_s24, %s2236_s27  ;;  %p304_p0 = scmp.ne.s32.totalorder %s2135_s23, %s2131_s22 }
   0x9   : > { %p292_p1 = scmp.eq.s32.totalorder %s291_s29, 0  ;;  %p305_p2 = scmp.eq.s32.totalorder %s2232_s25, 7 }
   0xa   : > { %p310_p3 = scmp.ne.s32.totalorder %s2131_s22, %s2127_s21  ;;  %p311_p4 = scmp.eq.s32.totalorder %s1561_s26, 7 }
   0xb   : > { %s2247_s30 = scalar_select %p292_p1, %s2135_s23, %s294_s28  }
   0xc   : > { %p2249_p5 = por %p305_p2, %p304_p0  ;;  %p2253_p6 = por %p311_p4, %p310_p3 }
   0xd   : > { %p1564_p7 = scmp.ge.s32.totalorder %s2139_s24, 1  ;;  %p375_p8 = scmp.lt.s32.totalorder %s2139_s24, 9 }
   0xf   : > { %p376_p9 = pnand %p1564_p7, %p375_p8 }
  0x10   : > { %v447_v0 = vld [vmem:[%s2517_s2] sm:$0xff] (!%p376_p9)  ;;  %v448_v1 = vld [vmem:[%s2517_s2 + $0x8] sm:$0xff] (!%p376_p9)  ;;  %p421_p10 = scmp.lt.s32.totalorder (!%p376_p9), %s2232_s25, 7  ;;  %vm449_vm0 = vcmask (!%p376_p9), 130048   ;;  %s2532_s0 = sld [smem:[#allocation5_spill]] (!%p376_p9)  ;;  %vm586_vm1 = vcmask (!%p376_p9), 523264  }
  0x11   : > { %379 = sbr.rel (%p376_p9) target bundleno = 2363 (0x93b), region = 68  ;;  %v1928_v2 = vpack.c.bf16 (!%p376_p9), %v448_v1, %v447_v0  ;;  %s2533_s1 = sld [smem:[#allocation6_spill]] (!%p376_p9)  ;;  %v724_v12 = vld [vmem:[%s2519_s4] sm:$0xff] (!%p376_p9)  ;;  %v725_v13 = vld [vmem:[%s2519_s4 + $0x8] sm:$0xff] (!%p376_p9)  ;;  %v726_v14 = vld [vmem:[%s2519_s4 + $0x10] sm:$0xff] (!%p376_p9)  ;;  %vm728_vm2 = vcmask (!%p376_p9), 261120  }
  0x12   : > { %v1948_v15 = vpack.c.bf16 (!%p376_p9), %v725_v13, %v724_v12  ;;  %v727_v16 = vld [vmem:[%s2519_s4 + $0x18] sm:$0xff] (!%p376_p9)  ;;  %v1577_v37 = vld [vmem:[%s2518_s3] ss:$0 sm:$0xff] (!%p376_p9)  ;;  %v979_v63 = vld [vmem:[%s2521_s6 + $0x8] sm:$0xff] (!%p376_p9)  ;;  %vm984_vm3 = vcmask (!%p376_p9), 392192   ;;  %vm2142_vm4 = vmmov (!%p376_p9), 0  }
  0x13   : > { %1929 = vmatprep.subr.bf16.mxu0 (!%p376_p9), %v1928_v2  ;;  %v1952_v17 = vpack.c.bf16 (!%p376_p9), %v727_v16, %v726_v14  ;;  %v978_v62 = vld [vmem:[%s2521_s6] sm:$0xff] (!%p376_p9)  ;;  %v980_v0 = vld [vmem:[%s2521_s6 + $0x10] sm:$0xff] (!%p376_p9)  ;;  %vm1468_vm5 = vcmask (!%p376_p9), 1040384   ;;  %s419_s28 = sand.u32 (!%p376_p9), 1, %s2131_s22  }
  0x14   : > { %1931 = vmatpush3.bf16.msra.mxu0 (!%p376_p9), %v1928_v2  ;;  %v1972_v1 = vpack.c.bf16 (!%p376_p9), %v979_v63, %v978_v62  ;;  %v981_v2 = vld [vmem:[%s2521_s6 + $0x18] sm:$0xff] (!%p376_p9)  ;;  %v2141_v63 = vmov (!%p376_p9), 0.0|0.0   ;;  %s1482_s18 = scalar_lea.sflag (!%p376_p9), [#allocation3], %s419_s28 }
  0x15   : > { %1949 = vmatprep.subr.bf16.mxu0 (!%p376_p9), %v1948_v15 }
  0x18   : > { %s422_s19 = scalar_select %p421_p10, %s2232_s25, 7 }
  0x1a   : > { %s1626_s20 = sshll.u32 %s422_s19, 6 }
  0x1b   : > { %s425_s29 = scalar_lea.vmem %s2532_s0, %s1626_s20  ;;  %s2281_s17 = scalar_lea.vmem %s2533_s1, %s1626_s20 }
  0x1c   : > { %v431_v3 = vld [vmem:[%s425_s29] sm:$0xff]  ;;  %v432_v4 = vld [vmem:[%s425_s29 + $0x8] sm:$0xff]  ;;  %v433_v5 = vld [vmem:[%s425_s29 + $0x10] sm:$0xff]  ;;  %s420_s20 = scalar_lea.vmem [#allocation2], %s419_s28 }
  0x1d   : > { %1739 = vmatprep.mubr.msk.f32.mxu0 %vm449_vm0, %v431_v3  ;;  %v434_v6 = vld [vmem:[%s425_s29 + $0x18] sm:$0xff]  ;;  %v435_v7 = vld [vmem:[%s425_s29 + $0x20] sm:$0xff]  ;;  %v436_v8 = vld [vmem:[%s425_s29 + $0x28] sm:$0xff]  ;;  %v1976_v3 = vpack.c.bf16 %v981_v2, %v980_v0  ;;  %s1494_s15 = sshll.u32 %s420_s20, 4  ;;  %s2475_s15 = int_to_ptr.vmem [resolvable:$true] %s1494_s15 }
  0x1e   : > { %1740 = vmatmul.mubr.msk.f32.vlgmr.msra.gmra.mrb[0].mxu0 %vm449_vm0, %v432_v4  ;;  %v437_v9 = vld [vmem:[%s425_s29 + $0x30] sm:$0xff]  ;;  %v438_v10 = vld [vmem:[%s425_s29 + $0x38] sm:$0xff]  ;;  %v2284_v11 = vld [vmem:[%s2281_s17] sm:$0xff]  ;;  %s1623_s29 = sshll.u32 %s2232_s25, 4  ;;  %s2077_s19 = scalar_lea.vmem %s2475_s15, 16 }
  0x1f   : > { %1742 = vmatprep.mubr.msk.f32.mxu0 %vm449_vm0, %v433_v5  ;;  %1767 = vmatprep.mubr.msk.f32.mxu1 %vm586_vm1, %v2284_v11  ;;  %v2301_v30 = vld [vmem:[%s2281_s17 + $0x8] sm:$0xff]  ;;  %v2304_v31 = vld [vmem:[%s2281_s17 + $0x10] sm:$0xff]  ;;  %v2311_v32 = vld [vmem:[%s2281_s17 + $0x18] sm:$0xff]  ;;  %p2078_p11 = scmp.ne.s32.totalorder %s2475_s15, %s2077_s19  ;;  %s2145_s25 = smov [#allocation2]  }
  0x20   : > { %1951 = vmatpush3.bf16.msra.mxu0 %v1948_v15  ;;  %v2314_v33 = vld [vmem:[%s2281_s17 + $0x20] sm:$0xff]  ;;  %v2321_v34 = vld [vmem:[%s2281_s17 + $0x28] sm:$0xff]  ;;  %v2324_v35 = vld [vmem:[%s2281_s17 + $0x30] sm:$0xff]  ;;  %s2081_s26 = sshll.u32 %s2145_s25, 4  ;;  %s2082_s26 = int_to_ptr.vmem [resolvable:$false] %s2081_s26 }
  0x21   : > { %1953 = vmatprep.subr.bf16.mxu0 %v1952_v17  ;;  %v2331_v36 = vld [vmem:[%s2281_s17 + $0x38] sm:$0xff]  ;;  %v1311_v0 = vld [vmem:[%s2523_s8 + $0x20] sm:$0xff]  ;;  %s2473_s17 = scalar_lea.hbm %s2527_s12, %s1623_s29  ;;  %p2079_p12 = pnand %p2078_p11, %p2249_p5 }
  0x22   : > { %1743 = vmatmul.mubr.msk.f32.gmra.mrb[2].mxu0 %vm449_vm0, %v434_v6  ;;  %s2083_s1 = scalar_lea.vmem %s2082_s26, 32  ;;  %p2084_p0 = scmp.lt.s32.totalorder %s2475_s15, %s2082_s26 }
  0x23   : > { %1745 = vmatprep.mubr.msk.f32.mxu0 %vm449_vm0, %v435_v7  ;;  %p2080_p13 = pneg %p2079_p12  ;;  %p2085_p1 = scmp.lt.s32.totalorder %s2083_s1, %s2077_s19 }
  0x24   : > { %1955 = vmatpush3.bf16.msra.mxu0 %v1952_v17  ;;  %v982_v17 = vld [vmem:[%s2521_s6 + $0x20] sm:$0xff] }
  0x25   : > { %1973 = vmatprep.subr.bf16.mxu0 %v1972_v1  ;;  %p2086_p2 = por %p2085_p1, %p2084_p0 }
  0x26   : > { %1746 = vmatmul.mubr.msk.f32.gmra.mrb[4].mxu0 %vm449_vm0, %v436_v8 }
  0x27   : > { %1748 = vmatprep.mubr.msk.f32.mxu0 %vm449_vm0, %v437_v9  ;;  %p2087_p3 = pnand %p2086_p2, %p2080_p13 }
  0x2a   : > { %1749 = vmatmul.mubr.msk.f32.gmra.mrb[6].mxu0 %vm449_vm0, %v438_v10 }
  0xf1   : > { %v1741_v18 = vpop.f32.mrb[0].mxu0 }
  0xf2   : > { %v540_v19 = vpop.f32.mrb[1].mxu0 }
  0xf3   : > { %v1932_v20 = vpack.c.bf16 %v1741_v18, %v540_v19  ;;  %v983_v18 = vld [vmem:[%s2521_s6 + $0x28] sm:$0xff] }
  0xf4   : > { %v1980_v19 = vpack.c.bf16 %v983_v18, %v982_v17 }
  0xf5   : > { %v1744_v21 = vpop.f32.mrb[2].mxu0  ;;  %1933 = vmatprep.subr.bf16.mxu1 %v1932_v20 }
  0xf6   : > { %v550_v22 = vpop.f32.mrb[3].mxu0  ;;  %1935 = vmatpush3.bf16.msra.mxu1 %v1932_v20  ;;  %v1594_v20 = vld [vmem:[%s2520_s5] ss:$0 sm:$0xff] }
  0xf7   : > { %v1936_v23 = vpack.c.bf16 %v1744_v21, %v550_v22 }
  0xf9   : > { %v1747_v24 = vpop.f32.mrb[4].mxu0  ;;  %1937 = vmatprep.subr.bf16.mxu1 %v1936_v23 }
  0xfa   : > { %v560_v25 = vpop.f32.mrb[5].mxu0  ;;  %1939 = vmatpush3.bf16.msra.mxu1 %v1936_v23 }
  0xfb   : > { %v1940_v26 = vpack.c.bf16 %v1747_v24, %v560_v25 }
  0xfd   : > { %v1750_v27 = vpop.f32.mrb[6].mxu0  ;;  %1941 = vmatprep.subr.bf16.mxu1 %v1940_v26 }
  0xfe   : > { %v570_v28 = vpop.f32.mrb[7].mxu0  ;;  %1943 = vmatpush3.bf16.msra.mxu1 %v1940_v26 }
  0xff   : > { %v1944_v29 = vpack.c.bf16 %v1750_v27, %v570_v28 }
 0x101   : > { %1945 = vmatprep.subr.bf16.mxu1 %v1944_v29 }
 0x102   : > { %1947 = vmatpush3.bf16.msra.mxu1 %v1944_v29 }
 0x105   : > { %1768 = vmatmul.mubr.msk.f32.vlgmr.msra.gmra.mrb[0].mxu1 %vm586_vm1, %v2301_v30 }
 0x106   : > { %1770 = vmatprep.mubr.msk.f32.mxu1 %vm586_vm1, %v2304_v31 }
 0x109   : > { %1771 = vmatmul.mubr.msk.f32.gmra.mrb[2].mxu1 %vm586_vm1, %v2311_v32 }
 0x10a   : > { %1773 = vmatprep.mubr.msk.f32.mxu1 %vm586_vm1, %v2314_v33 }
 0x10d   : > { %1774 = vmatmul.mubr.msk.f32.gmra.mrb[4].mxu1 %vm586_vm1, %v2321_v34 }
 0x10e   : > { %1776 = vmatprep.mubr.msk.f32.mxu1 %vm586_vm1, %v2324_v35 }
 0x111   : > { %1777 = vmatmul.mubr.msk.f32.gmra.mrb[6].mxu1 %vm586_vm1, %v2331_v36 }
 0x112   : > { %1815 = vmatprep.mubr.msk.f32.mxu1 %vm586_vm1, %v2284_v11 }
 0x1d8   : > { %v1769_v38 = vpop.f32.mrb[0].mxu1 }
 0x1d9   : > { %v683_v39 = vadd.f32 %v1769_v38, %v1577_v37  ;;  %v677_v40 = vpop.f32.mrb[1].mxu1 }
 0x1da   : > { %v678_v41 = vadd.f32 %v1577_v37, %v677_v40 }
 0x1db   : > { %v717_v44 = vmax.f32 %v683_v39, 0.0 }
 0x1dc   : > { %v716_v42 = vmax.f32 %v678_v41, 0.0  ;;  %v1772_v43 = vpop.f32.mrb[2].mxu1 }
 0x1dd   : > { %v693_v45 = vadd.f32 %v1772_v43, %v1577_v37  ;;  %v687_v46 = vpop.f32.mrb[3].mxu1 }
 0x1de   : > { %v688_v47 = vadd.f32 %v1577_v37, %v687_v46  ;;  %1787 = vmatprep.mubr.msk.f32.mxu0 %vm728_vm2, %v716_v42 }
 0x1df   : > { %1788 = vmatmul.mubr.msk.f32.vlgmr.msra.gmra.mrb[8].mxu0 %vm728_vm2, %v717_v44  ;;  %v719_v50 = vmax.f32 %v693_v45, 0.0 }
 0x1e0   : > { %v718_v48 = vmax.f32 %v688_v47, 0.0  ;;  %v1775_v49 = vpop.f32.mrb[4].mxu1  ;;  %1975 = vmatpush3.bf16.msra.mxu0 %v1972_v1  ;;  %v1312_v1 = vld [vmem:[%s2523_s8 + $0x28] sm:$0xff] }
 0x1e1   : > { %v703_v51 = vadd.f32 %v1775_v49, %v1577_v37  ;;  %v697_v52 = vpop.f32.mrb[5].mxu1  ;;  %1977 = vmatprep.subr.bf16.mxu0 %v1976_v3  ;;  %v2019_v2 = vpack.c.bf16 %v1312_v1, %v1311_v0 }
 0x1e2   : > { %v698_v53 = vadd.f32 %v1577_v37, %v697_v52  ;;  %1790 = vmatprep.mubr.msk.f32.mxu0 %vm728_vm2, %v718_v48 }
 0x1e3   : > { %1791 = vmatmul.mubr.msk.f32.gmra.mrb[10].mxu0 %vm728_vm2, %v719_v50  ;;  %v721_v56 = vmax.f32 %v703_v51, 0.0 }
 0x1e4   : > { %v720_v54 = vmax.f32 %v698_v53, 0.0  ;;  %v1778_v55 = vpop.f32.mrb[6].mxu1  ;;  %1979 = vmatpush3.bf16.msra.mxu0 %v1976_v3  ;;  %v1313_v3 = vld [vmem:[%s2523_s8 + $0x30] sm:$0xff] }
 0x1e5   : > { %v713_v57 = vadd.f32 %v1778_v55, %v1577_v37  ;;  %v707_v58 = vpop.f32.mrb[7].mxu1  ;;  %1981 = vmatprep.subr.bf16.mxu0 %v1980_v19 }
 0x1e6   : > { %v708_v59 = vadd.f32 %v1577_v37, %v707_v58  ;;  %1793 = vmatprep.mubr.msk.f32.mxu0 %vm728_vm2, %v720_v54 }
 0x1e7   : > { %1794 = vmatmul.mubr.msk.f32.gmra.mrb[12].mxu0 %vm728_vm2, %v721_v56  ;;  %v723_v61 = vmax.f32 %v713_v57, 0.0 }
 0x1e8   : > { %v722_v60 = vmax.f32 %v708_v59, 0.0  ;;  %1983 = vmatpush3.bf16.msra.mxu0 %v1980_v19 }
 0x1e9   : > { %2000 = vmatprep.subr.bf16.mxu0 %v2141_v63 }
 0x1ea   : > { %1796 = vmatprep.mubr.msk.f32.mxu0 %vm728_vm2, %v722_v60 }
 0x1eb   : > { %1797 = vmatmul.mubr.msk.f32.gmra.mrb[14].mxu0 %vm728_vm2, %v723_v61 }
 0x2b2   : > { %v1789_v4 = vpop.f32.mrb[8].mxu0 }
 0x2b3   : > { %v819_v5 = vpop.f32.mrb[9].mxu0 }
 0x2b4   : > { %v1956_v6 = vpack.c.bf16 %v1789_v4, %v819_v5  ;;  %v1314_v4 = vld [vmem:[%s2523_s8 + $0x38] sm:$0xff] }
 0x2b5   : > { %v2022_v5 = vpack.c.bf16 %v1314_v4, %v1313_v3 }
 0x2b6   : > { %v1792_v7 = vpop.f32.mrb[10].mxu0  ;;  %1957 = vmatprep.subr.bf16.mxu1 %v1956_v6 }
 0x2b7   : > { %v829_v8 = vpop.f32.mrb[11].mxu0  ;;  %1959 = vmatpush3.bf16.msra.mxu1 %v1956_v6  ;;  %v1611_v6 = vld [vmem:[%s2522_s7] ss:$0 sm:$0xff] }
 0x2b8   : > { %v1960_v9 = vpack.c.bf16 %v1792_v7, %v829_v8 }
 0x2ba   : > { %v1795_v10 = vpop.f32.mrb[12].mxu0  ;;  %1961 = vmatprep.subr.bf16.mxu1 %v1960_v9 }
 0x2bb   : > { %v839_v12 = vpop.f32.mrb[13].mxu0  ;;  %1963 = vmatpush3.bf16.msra.mxu1 %v1960_v9 }
 0x2bc   : > { %v1964_v13 = vpack.c.bf16 %v1795_v10, %v839_v12 }
 0x2be   : > { %v1798_v14 = vpop.f32.mrb[14].mxu0  ;;  %1965 = vmatprep.subr.bf16.mxu1 %v1964_v13 }
 0x2bf   : > { %v849_v15 = vpop.f32.mrb[15].mxu0  ;;  %1967 = vmatpush3.bf16.msra.mxu1 %v1964_v13 }
 0x2c0   : > { %v1968_v16 = vpack.c.bf16 %v1798_v14, %v849_v15 }
 0x2c2   : > { %1969 = vmatprep.subr.bf16.mxu1 %v1968_v16 }
 0x2c3   : > { %1971 = vmatpush3.bf16.msra.mxu1 %v1968_v16 }
 0x2c6   : > { %1816 = vmatmul.mubr.msk.f32.vlgmr.msra.gmra.mrb[8].mxu1 %vm586_vm1, %v2301_v30 }
 0x2c7   : > { %1818 = vmatprep.mubr.msk.f32.mxu1 %vm586_vm1, %v2304_v31 }
 0x2ca   : > { %1819 = vmatmul.mubr.msk.f32.gmra.mrb[10].mxu1 %vm586_vm1, %v2311_v32 }
 0x2cb   : > { %1821 = vmatprep.mubr.msk.f32.mxu1 %vm586_vm1, %v2314_v33 }
 0x2ce   : > { %1822 = vmatmul.mubr.msk.f32.gmra.mrb[12].mxu1 %vm586_vm1, %v2321_v34 }
 0x2cf   : > { %1824 = vmatprep.mubr.msk.f32.mxu1 %vm586_vm1, %v2324_v35 }
 0x2d2   : > { %1825 = vmatmul.mubr.msk.f32.gmra.mrb[14].mxu1 %vm586_vm1, %v2331_v36 }
 0x2d3   : > { %1867 = vmatprep.mubr.msk.f32.mxu1 %vm586_vm1, %v2284_v11 }
 0x399   : > { %v1817_v21 = vpop.f32.mrb[8].mxu1 }
 0x39a   : > { %v937_v22 = vadd.f32 %v1817_v21, %v1594_v20  ;;  %v931_v23 = vpop.f32.mrb[9].mxu1 }
 0x39b   : > { %v932_v24 = vadd.f32 %v1594_v20, %v931_v23 }
 0x39c   : > { %v971_v26 = vmax.f32 %v937_v22, 0.0 }
 0x39d   : > { %v970_v11 = vmax.f32 %v932_v24, 0.0  ;;  %v1820_v25 = vpop.f32.mrb[10].mxu1 }
 0x39e   : > { %v947_v27 = vadd.f32 %v1820_v25, %v1594_v20  ;;  %v941_v28 = vpop.f32.mrb[11].mxu1 }
 0x39f   : > { %v942_v29 = vadd.f32 %v1594_v20, %v941_v28  ;;  %1839 = vmatprep.mubr.msk.f32.mxu0 %vm984_vm3, %v970_v11 }
 0x3a0   : > { %1840 = vmatmul.mubr.msk.f32.vlgmr.msra.gmra.mrb[16].mxu0 %vm984_vm3, %v971_v26  ;;  %v973_v39 = vmax.f32 %v947_v27, 0.0 }
 0x3a1   : > { %v972_v37 = vmax.f32 %v942_v29, 0.0  ;;  %v1823_v38 = vpop.f32.mrb[12].mxu1 }
 0x3a2   : > { %v957_v40 = vadd.f32 %v1823_v38, %v1594_v20  ;;  %v951_v41 = vpop.f32.mrb[13].mxu1 }
 0x3a3   : > { %v952_v42 = vadd.f32 %v1594_v20, %v951_v41  ;;  %1842 = vmatprep.mubr.msk.f32.mxu0 %vm984_vm3, %v972_v37 }
 0x3a4   : > { %1843 = vmatmul.mubr.msk.f32.gmra.mrb[18].mxu0 %vm984_vm3, %v973_v39  ;;  %v975_v45 = vmax.f32 %v957_v40, 0.0 }
 0x3a5   : > { %v974_v43 = vmax.f32 %v952_v42, 0.0  ;;  %v1826_v44 = vpop.f32.mrb[14].mxu1  ;;  %v2144_v42 = vmov 0.015625  }
 0x3a6   : > { %v967_v46 = vadd.f32 %v1826_v44, %v1594_v20  ;;  %v961_v47 = vpop.f32.mrb[15].mxu1  ;;  %v1391_v44 = vld [vmem:[%s2525_s10 + $0x8] sm:$0xff] }
 0x3a7   : > { %v962_v48 = vadd.f32 %v1594_v20, %v961_v47  ;;  %1845 = vmatprep.mubr.msk.f32.mxu0 %vm984_vm3, %v974_v43  ;;  %v1390_v43 = vld [vmem:[%s2525_s10] sm:$0xff] }
 0x3a8   : > { %1846 = vmatmul.mubr.msk.f32.gmra.mrb[20].mxu0 %vm984_vm3, %v975_v45  ;;  %v977_v50 = vmax.f32 %v967_v46, 0.0  ;;  %v2025_v45 = vpack.c.bf16 %v1391_v44, %v1390_v43 }
 0x3a9   : > { %v976_v49 = vmax.f32 %v962_v48, 0.0  ;;  %v1392_v48 = vld [vmem:[%s2525_s10 + $0x10] sm:$0xff] }
 0x3ab   : > { %1848 = vmatprep.mubr.msk.f32.mxu0 %vm984_vm3, %v976_v49  ;;  %v1393_v49 = vld [vmem:[%s2525_s10 + $0x18] sm:$0xff] }
 0x3ac   : > { %1849 = vmatmul.mubr.msk.f32.gmra.mrb[22].mxu0 %vm984_vm3, %v977_v50  ;;  %v2028_v50 = vpack.c.bf16 %v1393_v49, %v1392_v48 }
 0x473   : > { %v1841_v51 = vpop.f32.mrb[16].mxu0 }
 0x474   : > { %v1075_v52 = vpop.f32.mrb[17].mxu0 }
 0x475   : > { %v1984_v53 = vpack.c.bf16 %v1841_v51, %v1075_v52  ;;  %v1315_v51 = vld [vmem:[%s2524_s9] sm:$0x1] }
 0x477   : > { %v1844_v54 = vpop.f32.mrb[18].mxu0  ;;  %1985 = vmatprep.subr.bf16.mxu1 %v1984_v53 }
 0x478   : > { %v1085_v55 = vpop.f32.mrb[19].mxu0  ;;  %1987 = vmatpush3.bf16.msra.mxu1 %v1984_v53 }
 0x479   : > { %v1988_v56 = vpack.c.bf16 %v1844_v54, %v1085_v55 }
 0x47b   : > { %v1847_v57 = vpop.f32.mrb[20].mxu0  ;;  %1989 = vmatprep.subr.bf16.mxu1 %v1988_v56 }
 0x47c   : > { %v1095_v58 = vpop.f32.mrb[21].mxu0  ;;  %1991 = vmatpush3.bf16.msra.mxu1 %v1988_v56  ;;  %v1394_v56 = vld [vmem:[%s2526_s11] sm:$0x1] }
 0x47d   : > { %v1992_v59 = vpack.c.bf16 %v1847_v57, %v1095_v58 }
 0x47f   : > { %v1850_v60 = vpop.f32.mrb[22].mxu0  ;;  %1993 = vmatprep.subr.bf16.mxu1 %v1992_v59 }
 0x480   : > { %v1105_v61 = vpop.f32.mrb[23].mxu0  ;;  %1995 = vmatpush3.bf16.msra.mxu1 %v1992_v59 }
 0x481   : > { %v1996_v62 = vpack.c.bf16 %v1850_v60, %v1105_v61 }
 0x483   : > { %1997 = vmatprep.subr.bf16.mxu1 %v1996_v62 }
 0x484   : > { %1999 = vmatpush3.bf16.msra.mxu1 %v1996_v62 }
 0x485   : > { %2012 = vmatprep.subr.bf16.mxu1 %v2141_v63 }
 0x487   : > { %1868 = vmatmul.mubr.msk.f32.vlgmr.msra.gmra.mrb[16].mxu1 %vm586_vm1, %v2301_v30  ;;  %v2143_v30 = vmov 0.0  }
 0x488   : > { %1870 = vmatprep.mubr.msk.f32.mxu1 %vm586_vm1, %v2304_v31  ;;  %1895 = vmatprep.mubr.msk.f32.mxu0 %vm2142_vm4, %v2143_v30  ;;  %v1307_v31 = vld [vmem:[%s2523_s8] sm:$0xff] }
 0x48b   : > { %1871 = vmatmul.mubr.msk.f32.gmra.mrb[18].mxu1 %vm586_vm1, %v2311_v32  ;;  %v1308_v32 = vld [vmem:[%s2523_s8 + $0x8] sm:$0xff] }
 0x48c   : > { %1873 = vmatprep.mubr.msk.f32.mxu1 %vm586_vm1, %v2314_v33  ;;  %v1309_v33 = vld [vmem:[%s2523_s8 + $0x10] sm:$0xff] }
 0x48f   : > { %1874 = vmatmul.mubr.msk.f32.gmra.mrb[20].mxu1 %vm586_vm1, %v2321_v34  ;;  %v2013_v34 = vpack.c.bf16 %v1308_v32, %v1307_v31 }
 0x490   : > { %1876 = vmatprep.mubr.msk.f32.mxu1 %vm586_vm1, %v2324_v35  ;;  %v1310_v35 = vld [vmem:[%s2523_s8 + $0x18] sm:$0xff] }
 0x491   : > { %2014 = vmatpush3.bf16.msra.mxu1 %v2013_v34 }
 0x492   : > { %2015 = vmatprep.subr.bf16.mxu1 %v2141_v63 }
 0x493   : > { %1877 = vmatmul.mubr.msk.f32.gmra.mrb[22].mxu1 %vm586_vm1, %v2331_v36  ;;  %v2016_v36 = vpack.c.bf16 %v1310_v35, %v1309_v33 }
 0x494   : > { %1914 = vmatprep.mubr.msk.f32.mxu1 %vm2142_vm4, %v2143_v30 }
 0x495   : > { %2017 = vmatpush3.bf16.msra.mxu1 %v2016_v36 }
 0x496   : > { %2018 = vmatprep.subr.bf16.mxu1 %v2141_v63 }
 0x499   : > { %2020 = vmatpush3.bf16.msra.mxu1 %v2019_v2 }
 0x49a   : > { %2021 = vmatprep.subr.bf16.mxu1 %v2141_v63 }
 0x49d   : > { %2023 = vmatpush3.bf16.msra.mxu1 %v2022_v5 }
 0x55a   : > { %v1869_v7 = vpop.f32.mrb[16].mxu1 }
 0x55b   : > { %v1193_v8 = vadd.f32 %v1869_v7, %v1611_v6  ;;  %v1187_v9 = vpop.f32.mrb[17].mxu1 }
 0x55c   : > { %v1188_v10 = vadd.f32 %v1611_v6, %v1187_v9 }
 0x55d   : > { %v1227_v12 = vmax.f32 %v1193_v8, 0.0 }
 0x55e   : > { %v1226_v13 = vmax.f32 %v1188_v10, 0.0  ;;  %v1872_v14 = vpop.f32.mrb[18].mxu1 }
 0x55f   : > { %v1203_v15 = vadd.f32 %v1872_v14, %v1611_v6  ;;  %v1197_v16 = vpop.f32.mrb[19].mxu1 }
 0x560   : > { %v2001_v17 = vpack.c.bf16 %v1227_v12, %v1226_v13  ;;  %v1198_v18 = vadd.f32 %v1611_v6, %v1197_v16 }
 0x561   : > { %v1229_v19 = vmax.f32 %v1203_v15, 0.0 }
 0x562   : > { %v1228_v20 = vmax.f32 %v1198_v18, 0.0  ;;  %v1875_v21 = vpop.f32.mrb[20].mxu1  ;;  %2002 = vmatpush3.bf16.msra.mxu0 %v2001_v17 }
 0x563   : > { %v1213_v22 = vadd.f32 %v1875_v21, %v1611_v6  ;;  %v1207_v23 = vpop.f32.mrb[21].mxu1  ;;  %2003 = vmatprep.subr.bf16.mxu0 %v2141_v63 }
 0x564   : > { %v2004_v24 = vpack.c.bf16 %v1229_v19, %v1228_v20  ;;  %v1208_v11 = vadd.f32 %v1611_v6, %v1207_v23 }
 0x565   : > { %v1231_v25 = vmax.f32 %v1213_v22, 0.0 }
 0x566   : > { %v1230_v26 = vmax.f32 %v1208_v11, 0.0  ;;  %v1878_v27 = vpop.f32.mrb[22].mxu1  ;;  %2005 = vmatpush3.bf16.msra.mxu0 %v2004_v24 }
 0x567   : > { %v1223_v28 = vadd.f32 %v1878_v27, %v1611_v6  ;;  %v1217_v29 = vpop.f32.mrb[23].mxu1  ;;  %2006 = vmatprep.subr.bf16.mxu0 %v2141_v63 }
 0x568   : > { %v2007_v37 = vpack.c.bf16 %v1231_v25, %v1230_v26  ;;  %v1218_v38 = vadd.f32 %v1611_v6, %v1217_v29 }
 0x569   : > { %v1233_v39 = vmax.f32 %v1223_v28, 0.0 }
 0x56a   : > { %v1232_v40 = vmax.f32 %v1218_v38, 0.0  ;;  %2008 = vmatpush3.bf16.msra.mxu0 %v2007_v37 }
 0x56b   : > { %2009 = vmatprep.subr.bf16.mxu0 %v2141_v63 }
 0x56c   : > { %v2010_v41 = vpack.c.bf16 %v1233_v39, %v1232_v40 }
 0x56e   : > { %2011 = vmatpush3.bf16.msra.mxu0 %v2010_v41 }
 0x56f   : > { %2024 = vmatprep.subr.bf16.mxu0 %v2141_v63 }
 0x571   : > { %1896 = vmatmul.mubr.msk.f32.vlgmr.msra.gmra.mrb[24].mxu0 %vm586_vm1, %v2144_v42 }
 0x572   : > { %1925 = vmatprep.mubr.msk.f32.mxu0 %vm2142_vm4, %v2143_v30  ;;  %2026 = vmatpush3.bf16.msra.mxu0 %v2025_v45 }
 0x573   : > { %2027 = vmatprep.subr.bf16.mxu0 %v2141_v63 }
 0x576   : > { %2029 = vmatpush3.bf16.msra.mxu0 %v2028_v50 }
 0x644   : > { %v1303_v46 = vpop.f32.mrb[24].mxu0 }
 0x645   : > { %v1897_v47 = vpop.f32.mrb[25].mxu0  ;;  %1915 = vmatmul.mubr.msk.f32.vlgmr.msra.gmra.mrb[24].mxu1 %vm586_vm1, %v1303_v46 }
 0x718   : > { %v1385_v52 = vpop.f32.mrb[24].mxu1 }
 0x719   : > { %v1386_v53 = vadd.f32 %v1385_v52, %v1315_v51  ;;  %v1916_v54 = vpop.f32.mrb[25].mxu1 }
 0x71b   : > { %v1389_v55 = vmax.f32 %v1386_v53, 0.0 }
 0x71d   : > { %1926 = vmatmul.mubr.msk.f32.vlgmr.msra.gmra.mrb[26].mxu0 %vm728_vm2, %v1389_v55 }
 0x7f0   : > { %v1464_v57 = vpop.f32.mrb[26].mxu0 }
 0x7f1   : > { %v1465_v58 = vadd.f32 %v1464_v57, %v1394_v56  ;;  %v1927_v59 = vpop.f32.mrb[27].mxu0 }
 0x7f3   : > { %v1469_v60 = vsel %vm1468_vm5, %v1465_v58, -inf }
 0x7f4   : > { %1470 = vmax.xlane.f32.xlu0 %v1469_v60 }
 0x881   : > { %v1471_v61 = vpop.xlane.xlu0 %1470 }
 0x882   : > { %v1472_v62 = vsub.f32 %v1465_v58, %v1471_v61 }
 0x884   : > { %v1473_v63 = vmul.f32 1.442695, %v1472_v62 }
 0x886   : > { %2073 = vpow2.f32 %v1473_v63 }
 0x890   : > { %v2074_v30 = vpop.eup %2073 }
 0x891   : > { %v1475_v31 = vsel %vm1468_vm5, %v2074_v30, 0.0 }
 0x892   : > { %1476 = vadd.xlane.f32.xlu0 %v1475_v31 }
 0x91f   : > { %v1477_v32 = vpop.xlane.xlu0 %1476 }
 0x920   : > { %2075 = vrcp.f32 %v1477_v32 }
 0x92a   : > { %v2076_v33 = vpop.eup %2075 }
 0x92b   : > { %v1479_v34 = vmul.f32 %v2076_v33, %v2074_v30 }
 0x92d   : > { %1480 = vst [vmem:[%s420_s20] sm:$0x1] %v1479_v34 }
 0x92e   : > { %2090 = shalt.err (!%p2087_p3)
}
 0x92f   : > { %s2091_s28 = scalar_lea.hbm %s2473_s17, 16  ;;  %s2095_s0 = scalar_lea.hbm %s2527_s12, 128 }
 0x930   : > { %p2092_p4 = scmp.ne.s32.totalorder %s2473_s17, %s2091_s28  ;;  %p2096_p9 = scmp.lt.u32.totalorder %s2473_s17, %s2527_s12 }
 0x931   : > { %p2097_p10 = scmp.lt.u32.totalorder %s2095_s0, %s2091_s28  ;;  %p2099_p12 = scmp.lt.u32.totalorder %s2091_s28, %s2473_s17 }
 0x932   : > { %p2093_p7 = pnand %p2092_p4, %p2249_p5 }
 0x933   : > { %p2098_p11 = por %p2097_p10, %p2096_p9 }
 0x934   : > { %p2094_p8 = pneg %p2093_p7 }
 0x935   : > { %p2100_p13 = por %p2099_p12, %p2098_p11 }
 0x937   : > { %p2101_p0 = pnand %p2100_p13, %p2094_p8 }
 0x939   : > { %2104 = shalt.err (!%p2101_p0)
}
 0x93a   : > { %2030 = dma.vmem_to_hbm [thread:$0]  (%p2249_p5), %s2475_s15, 16, %s2473_s17, %s1482_s18  }
 0x93b PF: > { %p2036_p1 = scmp.ge.s32.totalorder %s2139_s24, 2  ;;  %s1506_s1 = sand.u32 1, %s2127_s21  }
 0x93c   : > { %s1507_s19 = scalar_lea.sflag [#allocation3], %s1506_s1 }
 0x93d   : > { %p2033_p2 = pnand %p2036_p1, %p2253_p6 }
 0x93f   : > { %2122 = dma.done.wait (!%p2033_p2), %s1507_s19, 16  }
 0x940   : > { %2124 = vsyncadd (!%p2033_p2), %s1507_s19, 4294967280  ;;  %p22_p3 = scmp.ge.s32.totalorder %s2236_s27, 10   ;;  %s2534_s21 = smov %s2131_s22 }
 0x941   : > { %s2535_s22 = smov %s2135_s23  ;;  %s2536_s23 = smov %s2247_s30 }
 0x942   : > { %s2537_s24 = smov %s2236_s27  ;;  %24 = sbr.rel (!%p22_p3) target bundleno = 6 (0x6), region = 106 }
 0x949   :  { %1511 = vsyncpa [#allocation3], 1 }
 0x94a   :  { %1513 = vsyncpa [#allocation3 + $0x1], 1 }

</bundles_post_ra>
